<compile_context>
chip_gen: v7x
topology: tpu7x:2x2x1
jax: 0.10.0
libtpu: 0.0.40
codegen_flags: <defaults>
</compile_context>

<pallas_src>
import functools

import jax
import jax.numpy as jnp
from jax.experimental import pallas as pl
from jax.experimental.pallas import tpu as pltpu


def _i2a_kernel(state_ref,              # VMEM (TB, state_dim)
                w1s_ref,                # VMEM (state_dim, 32)   fc1 weight, state part
                actc_ref,               # VMEM (R, 32)           per-step action+bias contrib
                wch_ref,                # VMEM (32, 32)          ws @ w1_state (state_head folded)
                w2_ref, b2_ref,         # VMEM (32, 32), (1, 32) fc2
                wimf_ref,               # VMEM (R*32, H)         ws @ wi1_t, flattened rows
                bim_ref,                # VMEM (1, H)            folded imagination bias
                wi2_ref, bi2_ref,       # VMEM (H, H), (1, H)    imagination[2]
                wh_ref, bh_ref,         # VMEM (H, A+1), (1, A+1) fused policy|value head
                out_ref,                # out  (TB, A+1)         [softmax probs | value]
                stage_ref,              # VMEM scratch (TB, R*32) staged fc2 activations
                *, rollout_len, action_dim, env_hidden):
    # Hoist only the genuinely reused loop-invariant tensors into registers.
    w1s = w1s_ref[...]
    actc = actc_ref[...]
    wch = wch_ref[...]
    w2 = w2_ref[...]
    b2 = b2_ref[...]

    state = state_ref[...]                        # (TB, state_dim)

    h2 = None
    # rollout_len is a static Python int -> unrolls at trace time, giving the
    # LLO scheduler visibility across the serial fc1/fc2 MXU chain.
    for t in range(rollout_len):
        if t == 0:
            # First step consumes the real input state.
            pre = jnp.dot(state, w1s, preferred_element_type=jnp.float32)
        else:
            # Later steps: state_head folded into fc1 -> one matmul instead of two.
            pre = jnp.dot(h2, wch, preferred_element_type=jnp.float32)
        h1 = jnp.maximum(pre + actc[t:t + 1, :], 0.0)                         # relu(fc1)
        h2 = jnp.maximum(
            jnp.dot(h1, w2, preferred_element_type=jnp.float32) + b2, 0.0)    # relu(fc2)
        # Stage this step's activation into the VMEM slab at a static lane
        # offset; the imagination projection is deferred to one big matmul.
        stage_ref[:, t * env_hidden:(t + 1) * env_hidden] = h2

    # Deferred imagination input projection: one K=R*32 matmul (single
    # full-depth MXU pass), then the rest of the imagination MLP.
    x = jnp.maximum(
        jnp.dot(stage_ref[...], wimf_ref[...], preferred_element_type=jnp.float32)
        + bim_ref[...], 0.0)
    x = jnp.maximum(
        jnp.dot(x, wi2_ref[...], preferred_element_type=jnp.float32) + bi2_ref[...],
        0.0)

    # Fused policy|value head: one matmul, then split columns.
    head = jnp.dot(x, wh_ref[...], preferred_element_type=jnp.float32) + bh_ref[...]
    logits = head[:, :action_dim]
    logits = logits - jnp.max(logits, axis=-1, keepdims=True)
    e = jnp.exp(logits)
    probs = e / jnp.sum(e, axis=-1, keepdims=True)
    # Single fused (TB, A+1) output: softmaxed probs | raw value.
    out_ref[...] = jnp.concatenate([probs, head[:, action_dim:]], axis=-1)


def i2a_forward(state, actions, params, *, block_b=None):
    """state: (B, state_dim) f32; actions: (rollout_len,) f32; params: dict."""
    batch, state_dim = state.shape
    action_dim = params["wp"].shape[1]
    hidden_dim = params["wi2"].shape[0]
    rollout_len = actions.shape[0]
    env_hidden = params["w2"].shape[1]              # 32 (fixed by the module)

    # ---- host-side algebraic folding (tiny matmuls, done outside the kernel) ----
    w1, b1 = params["w1"], params["b1"]
    w1_state = w1[:state_dim, :]                       # (sd, 32)
    w1_act = w1[state_dim:, :]                         # (1, 32)
    ws, bs = params["ws"], params["bs"]

    # per-step fc1 additive term: actions[t]*w1_act + b1 (+ bs@w1_state for t>=1,
    # because the incoming "state" for t>=1 carries the state_head bias bs)
    bs_chain = bs @ w1_state                           # (1, 32)
    act_contrib = actions[:, None] * w1_act + b1       # (R, 32)
    act_contrib = act_contrib.at[1:].add(bs_chain)

    # fc1 chained onto previous step's fc2 output: state_head folded in.
    W_chain = ws @ w1_state                            # (32, 32)

    # imagination input projection with state_head folded in, flattened so the
    # kernel can do one (B, R*32) @ (R*32, H) matmul after the rollout loop.
    wi1 = params["wi1"]                                # (sd*R, H)
    wi1_r = wi1.reshape(rollout_len, state_dim, hidden_dim)
    W_im = jnp.einsum("ij,rjh->rih", ws, wi1_r)        # (R, 32, H)
    W_im_flat = W_im.reshape(rollout_len * env_hidden, hidden_dim)   # (R*32, H)
    b_im = bs @ wi1_r.sum(axis=0) + params["bi1"]      # (1, H)

    # fused policy|value head
    w_head = jnp.concatenate([params["wp"], params["wv"]], axis=1)   # (H, A+1)
    b_head = jnp.concatenate([params["bp"], params["bv"]], axis=1)   # (1, A+1)

    # ---- grid policy ----
    # Default: one block (grid steps are a serial loop on v5e/v6e, so extra
    # blocks are pure per-step overhead at this problem size).  On v7x split
    # into exactly two sublane-aligned blocks so both TensorCores are used.
    if block_b is None:
        block_b = batch
        try:
            kind = jax.devices()[0].device_kind.lower()
            if "v7" in kind and batch >= 16 and batch % 16 == 0:
                block_b = batch // 2
        except Exception:
            pass
    # Guard: a partial split must keep every block a multiple of 8 rows and
    # divide the batch exactly; otherwise fall back to a single block.
    if batch % block_b != 0 or (block_b < batch and block_b % 8 != 0):
        block_b = batch
    grid = (batch // block_b,)

    bmap = lambda i: (i, 0)
    c2 = lambda i: (0, 0)

    in_specs = [
        pl.BlockSpec((block_b, state_dim), bmap),
        pl.BlockSpec(w1_state.shape, c2),
        pl.BlockSpec(act_contrib.shape, c2),
        pl.BlockSpec(W_chain.shape, c2),
        pl.BlockSpec(params["w2"].shape, c2),
        pl.BlockSpec(params["b2"].shape, c2),
        pl.BlockSpec(W_im_flat.shape, c2),
        pl.BlockSpec(b_im.shape, c2),
        pl.BlockSpec(params["wi2"].shape, c2),
        pl.BlockSpec(params["bi2"].shape, c2),
        pl.BlockSpec(w_head.shape, c2),
        pl.BlockSpec(b_head.shape, c2),
    ]
    out_specs = pl.BlockSpec((block_b, action_dim + 1), bmap)
    out_shape = jax.ShapeDtypeStruct((batch, action_dim + 1), jnp.float32)

    # Honest cost estimate: this is a tiny latency-bound custom call.
    flops_per_row = (
        rollout_len * 2 * (env_hidden * env_hidden + env_hidden * env_hidden)  # fc1 + fc2
        + 2 * (rollout_len * env_hidden) * hidden_dim                          # deferred im proj
        + 2 * hidden_dim * hidden_dim                                          # imagination[2]
        + 2 * hidden_dim * (action_dim + 1))                                   # fused head
    weight_bytes = 4 * int(
        w1_state.size + act_contrib.size + W_chain.size + params["w2"].size
        + params["b2"].size + W_im_flat.size + b_im.size + params["wi2"].size
        + params["bi2"].size + w_head.size + b_head.size)
    cost = pl.CostEstimate(
        flops=int(batch * flops_per_row),
        transcendentals=int(batch * action_dim),
        bytes_accessed=int(4 * batch * (state_dim + action_dim + 1)
                           + weight_bytes * grid[0]))

    kernel = functools.partial(
        _i2a_kernel, rollout_len=rollout_len, action_dim=action_dim,
        env_hidden=env_hidden)

    out = pl.pallas_call(
        kernel,
        out_shape=out_shape,
        grid=grid,
        in_specs=in_specs,
        out_specs=out_specs,
        scratch_shapes=[
            # Staged fc2 activations for the deferred imagination matmul.
            pltpu.VMEM((block_b, rollout_len * env_hidden), jnp.float32),
        ],
        cost_estimate=cost,
        compiler_params=pltpu.CompilerParams(
            dimension_semantics=("parallel",)),
        # Note: per-block VMEM footprint is ~block_b * 1.3 KiB + <200 KiB of
        # weights; well below the default scoped VMEM on all generations, so
        # no vmem_limit_bytes override is needed at these sizes.
    )(state, w1_state, act_contrib, W_chain, params["w2"], params["b2"],
      W_im_flat, b_im, params["wi2"], params["bi2"], w_head, b_head)

    probs = out[:, :action_dim]
    values = out[:, action_dim:]
    return probs, values


def _linear_params(key, in_dim, out_dim):
    """Deterministic PyTorch-style init, weight stored transposed (in, out)."""
    kw, kb = jax.random.split(key)
    bound = 1.0 / jnp.sqrt(float(in_dim))
    w = jax.random.uniform(kw, (in_dim, out_dim), jnp.float32, -bound, bound)
    b = jax.random.uniform(kb, (1, out_dim), jnp.float32, -bound, bound)
    return w, b


def make_params(key, state_dim, action_dim, rollout_len, hidden_dim):
    keys = jax.random.split(key, 7)
    p = {}
    p["w1"], p["b1"] = _linear_params(keys[0], state_dim + 1, 32)
    p["w2"], p["b2"] = _linear_params(keys[1], 32, 32)
    p["ws"], p["bs"] = _linear_params(keys[2], 32, state_dim)
    p["wi1"], p["bi1"] = _linear_params(keys[3], state_dim * rollout_len, hidden_dim)
    p["wi2"], p["bi2"] = _linear_params(keys[4], hidden_dim, hidden_dim)
    p["wp"], p["bp"] = _linear_params(keys[5], hidden_dim, action_dim)
    p["wv"], p["bv"] = _linear_params(keys[6], hidden_dim, 1)
    return p


def i2a_reference(state, actions, params):
    """Pure-JAX reference mirroring the PyTorch forward (no folding)."""
    batch = state.shape[0]
    imagined = []
    for t in range(actions.shape[0]):
        act_col = jnp.full((batch, 1), actions[t], dtype=jnp.float32)
        x = jnp.concatenate([state, act_col], axis=-1)
        h = jax.nn.relu(x @ params["w1"] + params["b1"])
        h = jax.nn.relu(h @ params["w2"] + params["b2"])
        state = h @ params["ws"] + params["bs"]
        imagined.append(state)
    im = jnp.concatenate(imagined, axis=-1)
    x = jax.nn.relu(im @ params["wi1"] + params["bi1"])
    x = jax.nn.relu(x @ params["wi2"] + params["bi2"])
    probs = jax.nn.softmax(x @ params["wp"] + params["bp"], axis=-1)
    values = x @ params["wv"] + params["bv"]
    return probs, values


if __name__ == "__main__":
    # Small shapes consistent with the module (MountainCar-like).
    state_dim, action_dim, rollout_len, hidden_dim, batch = 4, 3, 8, 32, 2

    key = jax.random.PRNGKey(0)
    k_state, k_act, k_params = jax.random.split(key, 3)

    state = jax.random.normal(k_state, (batch, state_dim), jnp.float32)
    # TODO(synk): action_space.sample() is stateful env sampling; actions are
    # pre-sampled deterministically on host instead.
    actions = jax.random.randint(
        k_act, (rollout_len,), 0, action_dim).astype(jnp.float32)
    params = make_params(k_params, state_dim, action_dim, rollout_len, hidden_dim)

    probs, values = jax.block_until_ready(i2a_forward(state, actions, params))
    probs_ref, values_ref = i2a_reference(state, actions, params)

    assert probs.shape == (batch, action_dim) and values.shape == (batch, 1)
    assert jnp.allclose(probs, probs_ref, rtol=1e-4, atol=1e-5)
    assert jnp.allclose(values, values_ref, rtol=1e-4, atol=1e-5)
    assert jnp.allclose(jnp.sum(probs, axis=-1), 1.0, atol=1e-5)

    print("KERNEL_OK")
</pallas_src>

<mosaic_0001>
module attributes {stable_mosaic.version = 11 : i64} {
  func.func @_i2a_kernel(%arg0: i32, %arg1: memref<2x4xf32, #tpu.memory_space<vmem>>, %arg2: memref<4x32xf32, #tpu.memory_space<vmem>>, %arg3: memref<8x32xf32, #tpu.memory_space<vmem>>, %arg4: memref<32x32xf32, #tpu.memory_space<vmem>>, %arg5: memref<32x32xf32, #tpu.memory_space<vmem>>, %arg6: memref<1x32xf32, #tpu.memory_space<vmem>>, %arg7: memref<256x32xf32, #tpu.memory_space<vmem>>, %arg8: memref<1x32xf32, #tpu.memory_space<vmem>>, %arg9: memref<32x32xf32, #tpu.memory_space<vmem>>, %arg10: memref<1x32xf32, #tpu.memory_space<vmem>>, %arg11: memref<32x4xf32, #tpu.memory_space<vmem>>, %arg12: memref<1x4xf32, #tpu.memory_space<vmem>>, %arg13: memref<2x4xf32, #tpu.memory_space<vmem>>, %arg14: memref<2x256xf32, #tpu.memory_space<vmem>>) attributes {dimension_semantics = [#tpu.dimension_semantics<parallel>], iteration_bounds = array<i64: 1>, scalar_prefetch = 0 : i64, scratch_operands = 1 : i64, tpu.core_type = #tpu.core_type<tc>, window_params = [{transform_indices = @transform_0, window_bounds = array<i64: 2, 4>}, {pipeline_mode = #tpu.pipeline_mode<synchronous>, transform_indices = @transform_1, window_bounds = array<i64: 4, 32>}, {pipeline_mode = #tpu.pipeline_mode<synchronous>, transform_indices = @transform_2, window_bounds = array<i64: 8, 32>}, {pipeline_mode = #tpu.pipeline_mode<synchronous>, transform_indices = @transform_3, window_bounds = array<i64: 32, 32>}, {pipeline_mode = #tpu.pipeline_mode<synchronous>, transform_indices = @transform_4, window_bounds = array<i64: 32, 32>}, {pipeline_mode = #tpu.pipeline_mode<synchronous>, transform_indices = @transform_5, window_bounds = array<i64: 1, 32>}, {pipeline_mode = #tpu.pipeline_mode<synchronous>, transform_indices = @transform_6, window_bounds = array<i64: 256, 32>}, {pipeline_mode = #tpu.pipeline_mode<synchronous>, transform_indices = @transform_7, window_bounds = array<i64: 1, 32>}, {pipeline_mode = #tpu.pipeline_mode<synchronous>, transform_indices = @transform_8, window_bounds = array<i64: 32, 32>}, {pipeline_mode = #tpu.pipeline_mode<synchronous>, transform_indices = @transform_9, window_bounds = array<i64: 1, 32>}, {pipeline_mode = #tpu.pipeline_mode<synchronous>, transform_indices = @transform_10, window_bounds = array<i64: 32, 4>}, {pipeline_mode = #tpu.pipeline_mode<synchronous>, transform_indices = @transform_11, window_bounds = array<i64: 1, 4>}, {transform_indices = @transform_12, window_bounds = array<i64: 2, 4>}]} {
    %c0 = arith.constant 0 : index
    %c0_0 = arith.constant 0 : index
    %0 = vector.load %arg2[%c0, %c0_0] : memref<4x32xf32, #tpu.memory_space<vmem>>, vector<4x32xf32>
    %c0_1 = arith.constant 0 : index
    %c0_2 = arith.constant 0 : index
    %1 = vector.load %arg3[%c0_1, %c0_2] : memref<8x32xf32, #tpu.memory_space<vmem>>, vector<8x32xf32>
    %c0_3 = arith.constant 0 : index
    %c0_4 = arith.constant 0 : index
    %2 = vector.load %arg4[%c0_3, %c0_4] : memref<32x32xf32, #tpu.memory_space<vmem>>, vector<32x32xf32>
    %c0_5 = arith.constant 0 : index
    %c0_6 = arith.constant 0 : index
    %3 = vector.load %arg5[%c0_5, %c0_6] : memref<32x32xf32, #tpu.memory_space<vmem>>, vector<32x32xf32>
    %c0_7 = arith.constant 0 : index
    %c0_8 = arith.constant 0 : index
    %4 = vector.load %arg6[%c0_7, %c0_8] : memref<1x32xf32, #tpu.memory_space<vmem>>, vector<1x32xf32>
    %c0_9 = arith.constant 0 : index
    %c0_10 = arith.constant 0 : index
    %5 = vector.load %arg1[%c0_9, %c0_10] : memref<2x4xf32, #tpu.memory_space<vmem>>, vector<2x4xf32>
    %cst = arith.constant dense<0.000000e+00> : vector<2x32xf32>
    %6 = tpu.matmul %5, %0, %cst {dimension_numbers = #tpu.dot_dimension_numbers<[1], [0], [0], [1], [0, 0, 1, 1], [], []>} : vector<2x4xf32>, vector<4x32xf32>, vector<2x32xf32> -> vector<2x32xf32>
    %7 = vector.extract_strided_slice %1 {offsets = [0, 0], sizes = [1, 32], strides = [1, 1]} : vector<8x32xf32> to vector<1x32xf32>
    %8 = vector.broadcast %7 : vector<1x32xf32> to vector<2x32xf32>
    %9 = arith.addf %6, %8 : vector<2x32xf32>
    %cst_11 = arith.constant 0.000000e+00 : f32
    %10 = vector.broadcast %cst_11 : f32 to vector<2x32xf32>
    %11 = arith.maximumf %9, %10 : vector<2x32xf32>
    %cst_12 = arith.constant dense<0.000000e+00> : vector<2x32xf32>
    %12 = tpu.matmul %11, %3, %cst_12 {dimension_numbers = #tpu.dot_dimension_numbers<[1], [0], [0], [1], [0, 0, 1, 1], [], []>} : vector<2x32xf32>, vector<32x32xf32>, vector<2x32xf32> -> vector<2x32xf32>
    %13 = vector.broadcast %4 : vector<1x32xf32> to vector<2x32xf32>
    %14 = arith.addf %12, %13 : vector<2x32xf32>
    %cst_13 = arith.constant 0.000000e+00 : f32
    %15 = vector.broadcast %cst_13 : f32 to vector<2x32xf32>
    %16 = arith.maximumf %14, %15 : vector<2x32xf32>
    %c0_14 = arith.constant 0 : index
    %c0_15 = arith.constant 0 : index
    %17 = vector.load %arg14[%c0_14, %c0_15] : memref<2x256xf32, #tpu.memory_space<vmem>>, vector<2x32xf32>
    tpu.vector_store %arg14[%c0_14, %c0_15], %16 {strides = array<i32>} : memref<2x256xf32, #tpu.memory_space<vmem>>, vector<2x32xf32>,
    %cst_16 = arith.constant dense<0.000000e+00> : vector<2x32xf32>
    %18 = tpu.matmul %16, %2, %cst_16 {dimension_numbers = #tpu.dot_dimension_numbers<[1], [0], [0], [1], [0, 0, 1, 1], [], []>} : vector<2x32xf32>, vector<32x32xf32>, vector<2x32xf32> -> vector<2x32xf32>
    %19 = vector.extract_strided_slice %1 {offsets = [1, 0], sizes = [1, 32], strides = [1, 1]} : vector<8x32xf32> to vector<1x32xf32>
    %20 = vector.broadcast %19 : vector<1x32xf32> to vector<2x32xf32>
    %21 = arith.addf %18, %20 : vector<2x32xf32>
    %cst_17 = arith.constant 0.000000e+00 : f32
    %22 = vector.broadcast %cst_17 : f32 to vector<2x32xf32>
    %23 = arith.maximumf %21, %22 : vector<2x32xf32>
    %cst_18 = arith.constant dense<0.000000e+00> : vector<2x32xf32>
    %24 = tpu.matmul %23, %3, %cst_18 {dimension_numbers = #tpu.dot_dimension_numbers<[1], [0], [0], [1], [0, 0, 1, 1], [], []>} : vector<2x32xf32>, vector<32x32xf32>, vector<2x32xf32> -> vector<2x32xf32>
    %25 = vector.broadcast %4 : vector<1x32xf32> to vector<2x32xf32>
    %26 = arith.addf %24, %25 : vector<2x32xf32>
    %cst_19 = arith.constant 0.000000e+00 : f32
    %27 = vector.broadcast %cst_19 : f32 to vector<2x32xf32>
    %28 = arith.maximumf %26, %27 : vector<2x32xf32>
    %c0_20 = arith.constant 0 : index
    %c32 = arith.constant 32 : index
    %29 = vector.load %arg14[%c0_20, %c32] : memref<2x256xf32, #tpu.memory_space<vmem>>, vector<2x32xf32>
    tpu.vector_store %arg14[%c0_20, %c32], %28 {strides = array<i32>} : memref<2x256xf32, #tpu.memory_space<vmem>>, vector<2x32xf32>,
    %cst_21 = arith.constant dense<0.000000e+00> : vector<2x32xf32>
    %30 = tpu.matmul %28, %2, %cst_21 {dimension_numbers = #tpu.dot_dimension_numbers<[1], [0], [0], [1], [0, 0, 1, 1], [], []>} : vector<2x32xf32>, vector<32x32xf32>, vector<2x32xf32> -> vector<2x32xf32>
    %31 = vector.extract_strided_slice %1 {offsets = [2, 0], sizes = [1, 32], strides = [1, 1]} : vector<8x32xf32> to vector<1x32xf32>
    %32 = vector.broadcast %31 : vector<1x32xf32> to vector<2x32xf32>
    %33 = arith.addf %30, %32 : vector<2x32xf32>
    %cst_22 = arith.constant 0.000000e+00 : f32
    %34 = vector.broadcast %cst_22 : f32 to vector<2x32xf32>
    %35 = arith.maximumf %33, %34 : vector<2x32xf32>
    %cst_23 = arith.constant dense<0.000000e+00> : vector<2x32xf32>
    %36 = tpu.matmul %35, %3, %cst_23 {dimension_numbers = #tpu.dot_dimension_numbers<[1], [0], [0], [1], [0, 0, 1, 1], [], []>} : vector<2x32xf32>, vector<32x32xf32>, vector<2x32xf32> -> vector<2x32xf32>
    %37 = vector.broadcast %4 : vector<1x32xf32> to vector<2x32xf32>
    %38 = arith.addf %36, %37 : vector<2x32xf32>
    %cst_24 = arith.constant 0.000000e+00 : f32
    %39 = vector.broadcast %cst_24 : f32 to vector<2x32xf32>
    %40 = arith.maximumf %38, %39 : vector<2x32xf32>
    %c0_25 = arith.constant 0 : index
    %c64 = arith.constant 64 : index
    %41 = vector.load %arg14[%c0_25, %c64] : memref<2x256xf32, #tpu.memory_space<vmem>>, vector<2x32xf32>
    tpu.vector_store %arg14[%c0_25, %c64], %40 {strides = array<i32>} : memref<2x256xf32, #tpu.memory_space<vmem>>, vector<2x32xf32>,
    %cst_26 = arith.constant dense<0.000000e+00> : vector<2x32xf32>
    %42 = tpu.matmul %40, %2, %cst_26 {dimension_numbers = #tpu.dot_dimension_numbers<[1], [0], [0], [1], [0, 0, 1, 1], [], []>} : vector<2x32xf32>, vector<32x32xf32>, vector<2x32xf32> -> vector<2x32xf32>
    %43 = vector.extract_strided_slice %1 {offsets = [3, 0], sizes = [1, 32], strides = [1, 1]} : vector<8x32xf32> to vector<1x32xf32>
    %44 = vector.broadcast %43 : vector<1x32xf32> to vector<2x32xf32>
    %45 = arith.addf %42, %44 : vector<2x32xf32>
    %cst_27 = arith.constant 0.000000e+00 : f32
    %46 = vector.broadcast %cst_27 : f32 to vector<2x32xf32>
    %47 = arith.maximumf %45, %46 : vector<2x32xf32>
    %cst_28 = arith.constant dense<0.000000e+00> : vector<2x32xf32>
    %48 = tpu.matmul %47, %3, %cst_28 {dimension_numbers = #tpu.dot_dimension_numbers<[1], [0], [0], [1], [0, 0, 1, 1], [], []>} : vector<2x32xf32>, vector<32x32xf32>, vector<2x32xf32> -> vector<2x32xf32>
    %49 = vector.broadcast %4 : vector<1x32xf32> to vector<2x32xf32>
    %50 = arith.addf %48, %49 : vector<2x32xf32>
    %cst_29 = arith.constant 0.000000e+00 : f32
    %51 = vector.broadcast %cst_29 : f32 to vector<2x32xf32>
    %52 = arith.maximumf %50, %51 : vector<2x32xf32>
    %c0_30 = arith.constant 0 : index
    %c96 = arith.constant 96 : index
    %53 = vector.load %arg14[%c0_30, %c96] : memref<2x256xf32, #tpu.memory_space<vmem>>, vector<2x32xf32>
    tpu.vector_store %arg14[%c0_30, %c96], %52 {strides = array<i32>} : memref<2x256xf32, #tpu.memory_space<vmem>>, vector<2x32xf32>,
    %cst_31 = arith.constant dense<0.000000e+00> : vector<2x32xf32>
    %54 = tpu.matmul %52, %2, %cst_31 {dimension_numbers = #tpu.dot_dimension_numbers<[1], [0], [0], [1], [0, 0, 1, 1], [], []>} : vector<2x32xf32>, vector<32x32xf32>, vector<2x32xf32> -> vector<2x32xf32>
    %55 = vector.extract_strided_slice %1 {offsets = [4, 0], sizes = [1, 32], strides = [1, 1]} : vector<8x32xf32> to vector<1x32xf32>
    %56 = vector.broadcast %55 : vector<1x32xf32> to vector<2x32xf32>
    %57 = arith.addf %54, %56 : vector<2x32xf32>
    %cst_32 = arith.constant 0.000000e+00 : f32
    %58 = vector.broadcast %cst_32 : f32 to vector<2x32xf32>
    %59 = arith.maximumf %57, %58 : vector<2x32xf32>
    %cst_33 = arith.constant dense<0.000000e+00> : vector<2x32xf32>
    %60 = tpu.matmul %59, %3, %cst_33 {dimension_numbers = #tpu.dot_dimension_numbers<[1], [0], [0], [1], [0, 0, 1, 1], [], []>} : vector<2x32xf32>, vector<32x32xf32>, vector<2x32xf32> -> vector<2x32xf32>
    %61 = vector.broadcast %4 : vector<1x32xf32> to vector<2x32xf32>
    %62 = arith.addf %60, %61 : vector<2x32xf32>
    %cst_34 = arith.constant 0.000000e+00 : f32
    %63 = vector.broadcast %cst_34 : f32 to vector<2x32xf32>
    %64 = arith.maximumf %62, %63 : vector<2x32xf32>
    %c0_35 = arith.constant 0 : index
    %c128 = arith.constant 128 : index
    %65 = vector.load %arg14[%c0_35, %c128] : memref<2x256xf32, #tpu.memory_space<vmem>>, vector<2x32xf32>
    tpu.vector_store %arg14[%c0_35, %c128], %64 {strides = array<i32>} : memref<2x256xf32, #tpu.memory_space<vmem>>, vector<2x32xf32>,
    %cst_36 = arith.constant dense<0.000000e+00> : vector<2x32xf32>
    %66 = tpu.matmul %64, %2, %cst_36 {dimension_numbers = #tpu.dot_dimension_numbers<[1], [0], [0], [1], [0, 0, 1, 1], [], []>} : vector<2x32xf32>, vector<32x32xf32>, vector<2x32xf32> -> vector<2x32xf32>
    %67 = vector.extract_strided_slice %1 {offsets = [5, 0], sizes = [1, 32], strides = [1, 1]} : vector<8x32xf32> to vector<1x32xf32>
    %68 = vector.broadcast %67 : vector<1x32xf32> to vector<2x32xf32>
    %69 = arith.addf %66, %68 : vector<2x32xf32>
    %cst_37 = arith.constant 0.000000e+00 : f32
    %70 = vector.broadcast %cst_37 : f32 to vector<2x32xf32>
    %71 = arith.maximumf %69, %70 : vector<2x32xf32>
    %cst_38 = arith.constant dense<0.000000e+00> : vector<2x32xf32>
    %72 = tpu.matmul %71, %3, %cst_38 {dimension_numbers = #tpu.dot_dimension_numbers<[1], [0], [0], [1], [0, 0, 1, 1], [], []>} : vector<2x32xf32>, vector<32x32xf32>, vector<2x32xf32> -> vector<2x32xf32>
    %73 = vector.broadcast %4 : vector<1x32xf32> to vector<2x32xf32>
    %74 = arith.addf %72, %73 : vector<2x32xf32>
    %cst_39 = arith.constant 0.000000e+00 : f32
    %75 = vector.broadcast %cst_39 : f32 to vector<2x32xf32>
    %76 = arith.maximumf %74, %75 : vector<2x32xf32>
    %c0_40 = arith.constant 0 : index
    %c160 = arith.constant 160 : index
    %77 = vector.load %arg14[%c0_40, %c160] : memref<2x256xf32, #tpu.memory_space<vmem>>, vector<2x32xf32>
    tpu.vector_store %arg14[%c0_40, %c160], %76 {strides = array<i32>} : memref<2x256xf32, #tpu.memory_space<vmem>>, vector<2x32xf32>,
    %cst_41 = arith.constant dense<0.000000e+00> : vector<2x32xf32>
    %78 = tpu.matmul %76, %2, %cst_41 {dimension_numbers = #tpu.dot_dimension_numbers<[1], [0], [0], [1], [0, 0, 1, 1], [], []>} : vector<2x32xf32>, vector<32x32xf32>, vector<2x32xf32> -> vector<2x32xf32>
    %79 = vector.extract_strided_slice %1 {offsets = [6, 0], sizes = [1, 32], strides = [1, 1]} : vector<8x32xf32> to vector<1x32xf32>
    %80 = vector.broadcast %79 : vector<1x32xf32> to vector<2x32xf32>
    %81 = arith.addf %78, %80 : vector<2x32xf32>
    %cst_42 = arith.constant 0.000000e+00 : f32
    %82 = vector.broadcast %cst_42 : f32 to vector<2x32xf32>
    %83 = arith.maximumf %81, %82 : vector<2x32xf32>
    %cst_43 = arith.constant dense<0.000000e+00> : vector<2x32xf32>
    %84 = tpu.matmul %83, %3, %cst_43 {dimension_numbers = #tpu.dot_dimension_numbers<[1], [0], [0], [1], [0, 0, 1, 1], [], []>} : vector<2x32xf32>, vector<32x32xf32>, vector<2x32xf32> -> vector<2x32xf32>
    %85 = vector.broadcast %4 : vector<1x32xf32> to vector<2x32xf32>
    %86 = arith.addf %84, %85 : vector<2x32xf32>
    %cst_44 = arith.constant 0.000000e+00 : f32
    %87 = vector.broadcast %cst_44 : f32 to vector<2x32xf32>
    %88 = arith.maximumf %86, %87 : vector<2x32xf32>
    %c0_45 = arith.constant 0 : index
    %c192 = arith.constant 192 : index
    %89 = vector.load %arg14[%c0_45, %c192] : memref<2x256xf32, #tpu.memory_space<vmem>>, vector<2x32xf32>
    tpu.vector_store %arg14[%c0_45, %c192], %88 {strides = array<i32>} : memref<2x256xf32, #tpu.memory_space<vmem>>, vector<2x32xf32>,
    %cst_46 = arith.constant dense<0.000000e+00> : vector<2x32xf32>
    %90 = tpu.matmul %88, %2, %cst_46 {dimension_numbers = #tpu.dot_dimension_numbers<[1], [0], [0], [1], [0, 0, 1, 1], [], []>} : vector<2x32xf32>, vector<32x32xf32>, vector<2x32xf32> -> vector<2x32xf32>
    %91 = vector.extract_strided_slice %1 {offsets = [7, 0], sizes = [1, 32], strides = [1, 1]} : vector<8x32xf32> to vector<1x32xf32>
    %92 = vector.broadcast %91 : vector<1x32xf32> to vector<2x32xf32>
    %93 = arith.addf %90, %92 : vector<2x32xf32>
    %cst_47 = arith.constant 0.000000e+00 : f32
    %94 = vector.broadcast %cst_47 : f32 to vector<2x32xf32>
    %95 = arith.maximumf %93, %94 : vector<2x32xf32>
    %cst_48 = arith.constant dense<0.000000e+00> : vector<2x32xf32>
    %96 = tpu.matmul %95, %3, %cst_48 {dimension_numbers = #tpu.dot_dimension_numbers<[1], [0], [0], [1], [0, 0, 1, 1], [], []>} : vector<2x32xf32>, vector<32x32xf32>, vector<2x32xf32> -> vector<2x32xf32>
    %97 = vector.broadcast %4 : vector<1x32xf32> to vector<2x32xf32>
    %98 = arith.addf %96, %97 : vector<2x32xf32>
    %cst_49 = arith.constant 0.000000e+00 : f32
    %99 = vector.broadcast %cst_49 : f32 to vector<2x32xf32>
    %100 = arith.maximumf %98, %99 : vector<2x32xf32>
    %c0_50 = arith.constant 0 : index
    %c224 = arith.constant 224 : index
    %101 = vector.load %arg14[%c0_50, %c224] : memref<2x256xf32, #tpu.memory_space<vmem>>, vector<2x32xf32>
    tpu.vector_store %arg14[%c0_50, %c224], %100 {strides = array<i32>} : memref<2x256xf32, #tpu.memory_space<vmem>>, vector<2x32xf32>,
    %c0_51 = arith.constant 0 : index
    %c0_52 = arith.constant 0 : index
    %102 = vector.load %arg14[%c0_51, %c0_52] : memref<2x256xf32, #tpu.memory_space<vmem>>, vector<2x256xf32>
    %c0_53 = arith.constant 0 : index
    %c0_54 = arith.constant 0 : index
    %103 = vector.load %arg7[%c0_53, %c0_54] : memref<256x32xf32, #tpu.memory_space<vmem>>, vector<256x32xf32>
    %cst_55 = arith.constant dense<0.000000e+00> : vector<2x32xf32>
    %104 = tpu.matmul %102, %103, %cst_55 {dimension_numbers = #tpu.dot_dimension_numbers<[1], [0], [0], [1], [0, 0, 1, 1], [], []>} : vector<2x256xf32>, vector<256x32xf32>, vector<2x32xf32> -> vector<2x32xf32>
    %c0_56 = arith.constant 0 : index
    %c0_57 = arith.constant 0 : index
    %105 = vector.load %arg8[%c0_56, %c0_57] : memref<1x32xf32, #tpu.memory_space<vmem>>, vector<1x32xf32>
    %106 = vector.broadcast %105 : vector<1x32xf32> to vector<2x32xf32>
    %107 = arith.addf %104, %106 : vector<2x32xf32>
    %cst_58 = arith.constant 0.000000e+00 : f32
    %108 = vector.broadcast %cst_58 : f32 to vector<2x32xf32>
    %109 = arith.maximumf %107, %108 : vector<2x32xf32>
    %c0_59 = arith.constant 0 : index
    %c0_60 = arith.constant 0 : index
    %110 = vector.load %arg9[%c0_59, %c0_60] : memref<32x32xf32, #tpu.memory_space<vmem>>, vector<32x32xf32>
    %cst_61 = arith.constant dense<0.000000e+00> : vector<2x32xf32>
    %111 = tpu.matmul %109, %110, %cst_61 {dimension_numbers = #tpu.dot_dimension_numbers<[1], [0], [0], [1], [0, 0, 1, 1], [], []>} : vector<2x32xf32>, vector<32x32xf32>, vector<2x32xf32> -> vector<2x32xf32>
    %c0_62 = arith.constant 0 : index
    %c0_63 = arith.constant 0 : index
    %112 = vector.load %arg10[%c0_62, %c0_63] : memref<1x32xf32, #tpu.memory_space<vmem>>, vector<1x32xf32>
    %113 = vector.broadcast %112 : vector<1x32xf32> to vector<2x32xf32>
    %114 = arith.addf %111, %113 : vector<2x32xf32>
    %cst_64 = arith.constant 0.000000e+00 : f32
    %115 = vector.broadcast %cst_64 : f32 to vector<2x32xf32>
    %116 = arith.maximumf %114, %115 : vector<2x32xf32>
    %c0_65 = arith.constant 0 : index
    %c0_66 = arith.constant 0 : index
    %117 = vector.load %arg11[%c0_65, %c0_66] : memref<32x4xf32, #tpu.memory_space<vmem>>, vector<32x4xf32>
    %cst_67 = arith.constant dense<0.000000e+00> : vector<2x4xf32>
    %118 = tpu.matmul %116, %117, %cst_67 {dimension_numbers = #tpu.dot_dimension_numbers<[1], [0], [0], [1], [0, 0, 1, 1], [], []>} : vector<2x32xf32>, vector<32x4xf32>, vector<2x4xf32> -> vector<2x4xf32>
    %c0_68 = arith.constant 0 : index
    %c0_69 = arith.constant 0 : index
    %119 = vector.load %arg12[%c0_68, %c0_69] : memref<1x4xf32, #tpu.memory_space<vmem>>, vector<1x4xf32>
    %120 = vector.broadcast %119 : vector<1x4xf32> to vector<2x4xf32>
    %121 = arith.addf %118, %120 : vector<2x4xf32>
    %122 = vector.extract_strided_slice %121 {offsets = [0, 0], sizes = [2, 3], strides = [1, 1]} : vector<2x4xf32> to vector<2x3xf32>
    %cst_70 = arith.constant dense<0xFF800000> : vector<2xf32>
    %123 = vector.multi_reduction <maximumf>, %122, %cst_70 [1] : vector<2x3xf32> to vector<2xf32>
    %124 = vector.shape_cast %123 : vector<2xf32> to vector<2x1xf32>
    %125 = vector.broadcast %124 : vector<2x1xf32> to vector<2x3xf32>
    %126 = arith.subf %122, %125 : vector<2x3xf32>
    %127 = math.exp %126 : vector<2x3xf32>
    %cst_71 = arith.constant dense<0.000000e+00> : vector<2xf32>
    %128 = vector.multi_reduction <add>, %127, %cst_71 [1] : vector<2x3xf32> to vector<2xf32>
    %129 = vector.shape_cast %128 : vector<2xf32> to vector<2x1xf32>
    %130 = vector.broadcast %129 : vector<2x1xf32> to vector<2x3xf32>
    %131 = arith.divf %127, %130 : vector<2x3xf32>
    %132 = vector.extract_strided_slice %121 {offsets = [0, 3], sizes = [2, 1], strides = [1, 1]} : vector<2x4xf32> to vector<2x1xf32>
    %133 = tpu.concatenate %131, %132 in 1 : vector<2x3xf32>, vector<2x1xf32> -> vector<2x4xf32>
    %c0_72 = arith.constant 0 : index
    %c0_73 = arith.constant 0 : index
    %134 = vector.load %arg13[%c0_72, %c0_73] : memref<2x4xf32, #tpu.memory_space<vmem>>, vector<2x4xf32>
    tpu.vector_store %arg13[%c0_72, %c0_73], %133 {strides = array<i32>} : memref<2x4xf32, #tpu.memory_space<vmem>>, vector<2x4xf32>,
    return
  }
  func.func @transform_0(%arg0: i32) -> (i32, i32) {
    %c0_i32 = arith.constant 0 : i32
    %c0_i32_0 = arith.constant 0 : i32
    return %arg0, %c0_i32 : i32, i32
  }
  func.func @transform_1(%arg0: i32) -> (i32, i32) {
    %c0_i32 = arith.constant 0 : i32
    %c0_i32_0 = arith.constant 0 : i32
    %c0_i32_1 = arith.constant 0 : i32
    return %c0_i32, %c0_i32_0 : i32, i32
  }
  func.func @transform_2(%arg0: i32) -> (i32, i32) {
    %c0_i32 = arith.constant 0 : i32
    %c0_i32_0 = arith.constant 0 : i32
    %c0_i32_1 = arith.constant 0 : i32
    return %c0_i32, %c0_i32_0 : i32, i32
  }
  func.func @transform_3(%arg0: i32) -> (i32, i32) {
    %c0_i32 = arith.constant 0 : i32
    %c0_i32_0 = arith.constant 0 : i32
    %c0_i32_1 = arith.constant 0 : i32
    return %c0_i32, %c0_i32_0 : i32, i32
  }
  func.func @transform_4(%arg0: i32) -> (i32, i32) {
    %c0_i32 = arith.constant 0 : i32
    %c0_i32_0 = arith.constant 0 : i32
    %c0_i32_1 = arith.constant 0 : i32
    return %c0_i32, %c0_i32_0 : i32, i32
  }
  func.func @transform_5(%arg0: i32) -> (i32, i32) {
    %c0_i32 = arith.constant 0 : i32
    %c0_i32_0 = arith.constant 0 : i32
    %c0_i32_1 = arith.constant 0 : i32
    return %c0_i32, %c0_i32_0 : i32, i32
  }
  func.func @transform_6(%arg0: i32) -> (i32, i32) {
    %c0_i32 = arith.constant 0 : i32
    %c0_i32_0 = arith.constant 0 : i32
    %c0_i32_1 = arith.constant 0 : i32
    return %c0_i32, %c0_i32_0 : i32, i32
  }
  func.func @transform_7(%arg0: i32) -> (i32, i32) {
    %c0_i32 = arith.constant 0 : i32
    %c0_i32_0 = arith.constant 0 : i32
    %c0_i32_1 = arith.constant 0 : i32
    return %c0_i32, %c0_i32_0 : i32, i32
  }
  func.func @transform_8(%arg0: i32) -> (i32, i32) {
    %c0_i32 = arith.constant 0 : i32
    %c0_i32_0 = arith.constant 0 : i32
    %c0_i32_1 = arith.constant 0 : i32
    return %c0_i32, %c0_i32_0 : i32, i32
  }
  func.func @transform_9(%arg0: i32) -> (i32, i32) {
    %c0_i32 = arith.constant 0 : i32
    %c0_i32_0 = arith.constant 0 : i32
    %c0_i32_1 = arith.constant 0 : i32
    return %c0_i32, %c0_i32_0 : i32, i32
  }
  func.func @transform_10(%arg0: i32) -> (i32, i32) {
    %c0_i32 = arith.constant 0 : i32
    %c0_i32_0 = arith.constant 0 : i32
    %c0_i32_1 = arith.constant 0 : i32
    return %c0_i32, %c0_i32_0 : i32, i32
  }
  func.func @transform_11(%arg0: i32) -> (i32, i32) {
    %c0_i32 = arith.constant 0 : i32
    %c0_i32_0 = arith.constant 0 : i32
    %c0_i32_1 = arith.constant 0 : i32
    return %c0_i32, %c0_i32_0 : i32, i32
  }
  func.func @transform_12(%arg0: i32) -> (i32, i32) {
    %c0_i32 = arith.constant 0 : i32
    %c0_i32_0 = arith.constant 0 : i32
    return %arg0, %c0_i32 : i32, i32
  }
}

</mosaic_0001>

<bundles_post_ra>
// kernel: tpu_custom_call.1
= control target key start
LH: loop header
LB: loop body
LE: loop exit
PB: predicated region body
PF: predicated region fallthrough
CT: control target
= control target key end

     0   :  { %vm62_vm0 = vcmask 1043456   ;;  %vm58_vm1 = vcmask 31744   ;;  %v2184_v1 = vmov 0.0   ;;  %vm2185_vm2 = vmmov 0   ;;  %s2613_s0 = inlined_call_operand.vmem [shape: f32[2,4], index: 0, kind: input, shape index: {}]   ;;  %s2614_s1 = inlined_call_operand.vmem [shape: f32[4,32], index: 1, kind: input, shape index: {}]   ;;  %s2615_s2 = inlined_call_operand.vmem [shape: f32[8,32], index: 2, kind: input, shape index: {}]   ;;  %s2616_s3 = inlined_call_operand.vmem [shape: f32[32,32], index: 3, kind: input, shape index: {}]   ;;  %s2617_s4 = inlined_call_operand.vmem [shape: f32[32,32], index: 4, kind: input, shape index: {}]   ;;  %s2618_s5 = inlined_call_operand.vmem [shape: f32[1,32], index: 5, kind: input, shape index: {}]   ;;  %s2619_s6 = inlined_call_operand.vmem [shape: f32[256,32], index: 6, kind: input, shape index: {}]   ;;  %s2620_s7 = inlined_call_operand.vmem [shape: f32[1,32], index: 7, kind: input, shape index: {}]   ;;  %s2621_s8 = inlined_call_operand.vmem [shape: f32[32,32], index: 8, kind: input, shape index: {}]   ;;  %s2622_s9 = inlined_call_operand.vmem [shape: f32[1,32], index: 9, kind: input, shape index: {}]   ;;  %s2623_s10 = inlined_call_operand.vmem [shape: f32[32,4], index: 10, kind: input, shape index: {}]   ;;  %s2624_s11 = inlined_call_operand.vmem [shape: f32[1,4], index: 11, kind: input, shape index: {}]   ;;  %s2625_s12 = inlined_call_operand.hbm [shape: f32[2,4], index: 12, kind: output, shape index: {}]  }
   0x1   :  { %v42_v0 = vld [vmem:[%s2614_s1] sm:$0xf]  ;;  %1822 = vmatprep.subr.mxu1 %v2184_v1  ;;  %1824 = vmatprep.mubr.msk.f32.mxu1 %vm2185_vm2, %v2184_v1  ;;  %v49_v4 = vld [vmem:[%s2617_s4 + $0x8] sm:$0xff]  ;;  %v2186_v6 = vmov 0.0|0.0  }
   0x2   :  { %v53_v2 = vld [vmem:[%s2613_s0] sm:$0x3]  ;;  %1823 = vmatpush3.msk.msra.mxu1 %vm62_vm0, %v42_v0  ;;  %2020 = vmatprep.subr.bf16.mxu0 %v2186_v6 }
   0x3   :  { %v48_v3 = vld [vmem:[%s2617_s4] sm:$0xff] }
   0x4   :  { %v2272_v5 = vpack.c.bf16 %v49_v4, %v48_v3 }
   0x5   :  { %17 = vsyncpa [#allocation4], 0  ;;  %1825 = vmatmul.mubr.msk.f32.vlgmr.msra.gmra.mrb[0].mxu1 %vm58_vm1, %v53_v2  ;;  %2014 = vmatprep.subr.bf16.mxu1 %v2186_v6  ;;  %v50_v7 = vld [vmem:[%s2617_s4 + $0x10] sm:$0xff]  ;;  %v51_v8 = vld [vmem:[%s2617_s4 + $0x18] sm:$0xff]  ;;  %v54_v13 = vlaneseq  ;;  %vm143_vm3 = vcmask 261120   ;;  %vm218_vm4 = vcmask 254976  }
   0x6   :  { %2016 = vmatpush3.bf16.msra.mxu1 %v2272_v5  ;;  %1835 = vmatprep.mubr.msk.f32.mxu1 %vm2185_vm2, %v2184_v1  ;;  %v2288_v9 = vpack.c.bf16 %v51_v8, %v50_v7  ;;  %v44_v10 = vld [vmem:[%s2616_s3] sm:$0xff]  ;;  %v45_v11 = vld [vmem:[%s2616_s3 + $0x8] sm:$0xff]  ;;  %v46_v22 = vld [vmem:[%s2616_s3 + $0x10] sm:$0xff]  ;;  %v2187_v36 = vmov 1983009808   ;;  %vm383_vm5 = vcmask 517376  }
   0x7   :  { %2017 = vmatprep.subr.bf16.mxu1 %v2186_v6  ;;  %1846 = vmatprep.mubr.msk.f32.mxu0 %vm2185_vm2, %v2184_v1  ;;  %v2298_v12 = vpack.c.bf16 %v45_v11, %v44_v10  ;;  %v2302_v14 = vshrl.u32 %v54_v13, 7  ;;  %v2308_v16 = vld [vmem:[%s2615_s2] sm:$0xff]  ;;  %v47_v23 = vld [vmem:[%s2616_s3 + $0x18] sm:$0xff]  ;;  %v374_v37 = vunpack.c.l.s4 %v2187_v36  ;;  %s2188_s3 = smov 32   ;;  %vm547_vm6 = vcmask 779776   ;;  %s2190_s23 = smov 96  }
   0x8   :  { %v2324_v24 = vpack.c.bf16 %v47_v23, %v46_v22  ;;  %v2331_v25 = vld [vmem:[%s2618_s5] ss:$0 sm:$0xff]  ;;  %s2189_s5 = smov 64   ;;  %vm711_vm7 = vcmask 1042176   ;;  %vm1646_vm8 = vcmask 17408   ;;  %vm1658_vm9 = vcmask 23552  }
   0x9   :  { %2022 = vmatpush3.bf16.msra.mxu0 %v2298_v12  ;;  %v56_v15 = vsub.s32 0, %v2302_v14  ;;  %v222_v30 = vsub.s32 1, %v2302_v14  ;;  %v375_v38 = vunpack.c.0.s8 %v374_v37  ;;  %v387_v46 = vsub.s32 2, %v2302_v14 }
   0xa   :  { %2019 = vmatpush3.bf16.msra.mxu1 %v2288_v9  ;;  %2023 = vmatprep.subr.bf16.mxu0 %v2186_v6  ;;  %v551_v58 = vsub.s32 3, %v2302_v14  ;;  %v715_v7 = vsub.s32 4, %v2302_v14  ;;  %vm1660_vm10 = vcmask 25600  }
   0xb   :  { %2026 = vmatprep.subr.bf16.mxu1 %v2186_v6  ;;  %v57_v17 = vrot.slane %v2308_v16, %v56_v15  ;;  %v223_v31 = vrot.slane %v2308_v16, %v222_v30  ;;  %v2353_v42 = vsub.s32 %v375_v38, %v2302_v14  ;;  %v388_v47 = vrot.slane %v2308_v16, %v387_v46 }
   0xc   :  { %v552_v59 = vrot.slane %v2308_v16, %v551_v58  ;;  %v716_v8 = vrot.slane %v2308_v16, %v715_v7  ;;  %v1379_v7 = vld [vmem:[%s2619_s6 + $0xb8] sm:$0xff] }
   0xd   :  { %2025 = vmatpush3.bf16.msra.mxu0 %v2324_v24 }
   0xe   :  { %2032 = vmatprep.subr.bf16.mxu0 %v2186_v6 }
  0xd8   :  { %v132_v18 = vpop.f32.mrb[0].mxu1 }
  0xd9   :  { %v133_v19 = vadd.f32 %v132_v18, %v57_v17  ;;  %v1826_v20 = vpop.f32.mrb[1].mxu1 }
  0xdb   :  { %v136_v21 = vmax.f32 %v133_v19, 0.0 }
  0xdd   :  { %1836 = vmatmul.mubr.msk.f32.vlgmr.msra.gmra.mrb[2].mxu1 %vm143_vm3, %v136_v21  ;;  %v867_v21 = vsub.s32 5, %v2302_v14 }
  0xde   :  { %2028 = vmatpush3.bf16.msra.mxu1 %v2272_v5  ;;  %1857 = vmatprep.mubr.msk.f32.mxu1 %vm2185_vm2, %v2184_v1 }
  0xdf   :  { %2029 = vmatprep.subr.bf16.mxu1 %v2186_v6  ;;  %v868_v22 = vrot.slane %v2308_v16, %v867_v21  ;;  %v1365_v21 = vld [vmem:[%s2619_s6 + $0x48] sm:$0xff] }
  0xe2   :  { %2031 = vmatpush3.bf16.msra.mxu1 %v2288_v9 }
  0xe3   :  { %2038 = vmatprep.subr.bf16.mxu1 %v2186_v6 }
 0x1b0   :  { %v213_v26 = vpop.f32.mrb[2].mxu1 }
 0x1b1   :  { %v214_v27 = vadd.f32 %v2331_v25, %v213_v26  ;;  %v1837_v28 = vpop.f32.mrb[3].mxu1 }
 0x1b3   :  { %v217_v29 = vmax.f32 %v214_v27, 0.0 }
 0x1b5   :  { %219 = vst.msk [vmem:[#allocation2] sm:$0x3] %vm218_vm4, %v217_v29  ;;  %1847 = vmatmul.mubr.msk.f32.vlgmr.msra.gmra.mrb[0].mxu0 %vm143_vm3, %v217_v29 }
 0x1b6   :  { %2034 = vmatpush3.bf16.msra.mxu0 %v2298_v12  ;;  %1868 = vmatprep.mubr.msk.f32.mxu0 %vm2185_vm2, %v2184_v1 }
 0x1b7   :  { %2035 = vmatprep.subr.bf16.mxu0 %v2186_v6 }
 0x1ba   :  { %2037 = vmatpush3.bf16.msra.mxu0 %v2324_v24 }
 0x1bb   :  { %2044 = vmatprep.subr.bf16.mxu0 %v2186_v6 }
 0x288   :  { %v293_v32 = vpop.f32.mrb[0].mxu0 }
 0x289   :  { %v294_v33 = vadd.f32 %v293_v32, %v223_v31  ;;  %v1848_v34 = vpop.f32.mrb[1].mxu0 }
 0x28b   :  { %v297_v35 = vmax.f32 %v294_v33, 0.0 }
 0x28d   :  { %1858 = vmatmul.mubr.msk.f32.vlgmr.msra.gmra.mrb[4].mxu1 %vm143_vm3, %v297_v35 }
 0x28e   :  { %2040 = vmatpush3.bf16.msra.mxu1 %v2272_v5  ;;  %1879 = vmatprep.mubr.msk.f32.mxu1 %vm2185_vm2, %v2184_v1 }
 0x28f   :  { %2041 = vmatprep.subr.bf16.mxu1 %v2186_v6 }
 0x292   :  { %2043 = vmatpush3.bf16.msra.mxu1 %v2288_v9 }
 0x293   :  { %2050 = vmatprep.subr.bf16.mxu1 %v2186_v6 }
 0x360   :  { %v367_v39 = vpop.f32.mrb[4].mxu1 }
 0x361   :  { %v368_v40 = vadd.f32 %v2331_v25, %v367_v39  ;;  %v1859_v41 = vpop.f32.mrb[5].mxu1 }
 0x363   :  { %v371_v43 = vmax.f32 %v368_v40, 0.0 }
 0x365   :  { %1869 = vmatmul.mubr.msk.f32.vlgmr.msra.gmra.mrb[2].mxu0 %vm143_vm3, %v371_v43  ;;  %v379_v44 = vrot.slane %v371_v43, %v2353_v42 }
 0x366   :  { %2046 = vmatpush3.bf16.msra.mxu0 %v2298_v12  ;;  %1890 = vmatprep.mubr.msk.f32.mxu0 %vm2185_vm2, %v2184_v1 }
 0x367   :  { %380 = vrot.lane.b32.xlu0 %v379_v44, %s2188_s3  ;;  %2047 = vmatprep.subr.bf16.mxu0 %v2186_v6 }
 0x36a   :  { %2049 = vmatpush3.bf16.msra.mxu0 %v2324_v24 }
 0x36b   :  { %2056 = vmatprep.subr.bf16.mxu0 %v2186_v6 }
 0x3d9   :  { %v381_v45 = vpop.permute.xlu0 %380 }
 0x3da   :  { %384 = vst.msk [vmem:[#allocation2] sm:$0x3] %vm383_vm5, %v381_v45 }
 0x438   :  { %v457_v48 = vpop.f32.mrb[2].mxu0 }
 0x439   :  { %v458_v49 = vadd.f32 %v457_v48, %v388_v47  ;;  %v1870_v50 = vpop.f32.mrb[3].mxu0  ;;  %v1194_v47 = vsub.s32 7, %v2302_v14 }
 0x43b   :  { %v461_v51 = vmax.f32 %v458_v49, 0.0 }
 0x43d   :  { %1880 = vmatmul.mubr.msk.f32.vlgmr.msra.gmra.mrb[6].mxu1 %vm143_vm3, %v461_v51 }
 0x43e   :  { %2052 = vmatpush3.bf16.msra.mxu1 %v2272_v5  ;;  %1901 = vmatprep.mubr.msk.f32.mxu1 %vm2185_vm2, %v2184_v1 }
 0x43f   :  { %2053 = vmatprep.subr.bf16.mxu1 %v2186_v6 }
 0x442   :  { %2055 = vmatpush3.bf16.msra.mxu1 %v2288_v9 }
 0x443   :  { %2062 = vmatprep.subr.bf16.mxu1 %v2186_v6 }
 0x510   :  { %v531_v52 = vpop.f32.mrb[6].mxu1 }
 0x511   :  { %v532_v53 = vadd.f32 %v2331_v25, %v531_v52  ;;  %v1881_v54 = vpop.f32.mrb[7].mxu1  ;;  %v1372_v52 = vld [vmem:[%s2619_s6 + $0x80] sm:$0xff] }
 0x512   :  { %v1357_v54 = vld [vmem:[%s2619_s6 + $0x8] sm:$0xff] }
 0x513   :  { %v535_v55 = vmax.f32 %v532_v53, 0.0  ;;  %v1373_v53 = vld [vmem:[%s2619_s6 + $0x88] sm:$0xff] }
 0x515   :  { %1891 = vmatmul.mubr.msk.f32.vlgmr.msra.gmra.mrb[4].mxu0 %vm143_vm3, %v535_v55  ;;  %v543_v56 = vrot.slane %v535_v55, %v2353_v42  ;;  %v1374_v55 = vld [vmem:[%s2619_s6 + $0x90] sm:$0xff] }
 0x516   :  { %2058 = vmatpush3.bf16.msra.mxu0 %v2298_v12  ;;  %1912 = vmatprep.mubr.msk.f32.mxu0 %vm2185_vm2, %v2184_v1 }
 0x517   :  { %544 = vrot.lane.b32.xlu1 %v543_v56, %s2189_s5  ;;  %2059 = vmatprep.subr.bf16.mxu0 %v2186_v6  ;;  %v1375_v56 = vld [vmem:[%s2619_s6 + $0x98] sm:$0xff] }
 0x518   :  { %v2108_v58 = vpack.c.bf16 %v1375_v56, %v1374_v55  ;;  %v1563_v55 = vld [vmem:[%s2623_s10 + $0x8] sm:$0xff] }
 0x51a   :  { %2061 = vmatpush3.bf16.msra.mxu0 %v2324_v24 }
 0x51b   :  { %2068 = vmatprep.subr.bf16.mxu0 %v2186_v6 }
 0x589   :  { %v545_v57 = vpop.permute.xlu1 %544 }
 0x58a   :  { %548 = vst.msk [vmem:[#allocation2] sm:$0x3] %vm547_vm6, %v545_v57 }
 0x5e8   :  { %v621_v60 = vpop.f32.mrb[4].mxu0 }
 0x5e9   :  { %v622_v61 = vadd.f32 %v621_v60, %v552_v59  ;;  %v1892_v62 = vpop.f32.mrb[5].mxu0  ;;  %v1358_v59 = vld [vmem:[%s2619_s6 + $0x10] sm:$0xff]  ;;  %v1359_v60 = vld [vmem:[%s2619_s6 + $0x18] sm:$0xff] }
 0x5ea   :  { %v1377_v62 = vld [vmem:[%s2619_s6 + $0xa8] sm:$0xff] }
 0x5eb   :  { %v625_v63 = vmax.f32 %v622_v61, 0.0  ;;  %v1376_v61 = vld [vmem:[%s2619_s6 + $0xa0] sm:$0xff] }
 0x5ed   :  { %1902 = vmatmul.mubr.msk.f32.vlgmr.msra.gmra.mrb[8].mxu1 %vm143_vm3, %v625_v63  ;;  %v2110_v63 = vpack.c.bf16 %v1359_v60, %v1358_v59  ;;  %v1564_v59 = vld [vmem:[%s2623_s10 + $0x10] sm:$0xff]  ;;  %v1565_v60 = vld [vmem:[%s2623_s10 + $0x18] sm:$0xff] }
 0x5ee   :  { %2064 = vmatpush3.bf16.msra.mxu1 %v2272_v5  ;;  %1923 = vmatprep.mubr.msk.f32.mxu1 %vm2185_vm2, %v2184_v1 }
 0x5ef   :  { %2065 = vmatprep.subr.bf16.mxu1 %v2186_v6 }
 0x5f2   :  { %2067 = vmatpush3.bf16.msra.mxu1 %v2288_v9 }
 0x5f3   :  { %2074 = vmatprep.subr.bf16.mxu1 %v2186_v6 }
 0x6c0   :  { %v695_v0 = vpop.f32.mrb[8].mxu1 }
 0x6c1   :  { %v696_v2 = vadd.f32 %v2331_v25, %v695_v0  ;;  %v1903_v3 = vpop.f32.mrb[9].mxu1  ;;  %v2112_v0 = vpack.c.bf16 %v1377_v62, %v1376_v61  ;;  %v2146_v61 = vpack.c.bf16 %v1565_v60, %v1564_v59  ;;  %v1696_v62 = vld [vmem:[%s2622_s9] ss:$0 sm:$0xff]  ;;  %s2191_s9 = smov [#allocation3]  }
 0x6c2   :  { %v1361_v3 = vld [vmem:[%s2619_s6 + $0x28] sm:$0xff] }
 0x6c3   :  { %v699_v4 = vmax.f32 %v696_v2, 0.0  ;;  %v1360_v2 = vld [vmem:[%s2619_s6 + $0x20] sm:$0xff] }
 0x6c5   :  { %1913 = vmatmul.mubr.msk.f32.vlgmr.msra.gmra.mrb[6].mxu0 %vm143_vm3, %v699_v4  ;;  %v707_v34 = vrot.slane %v699_v4, %v2353_v42  ;;  %v1378_v4 = vld [vmem:[%s2619_s6 + $0xb0] sm:$0xff] }
 0x6c6   :  { %2070 = vmatpush3.bf16.msra.mxu0 %v2298_v12  ;;  %1934 = vmatprep.mubr.msk.f32.mxu0 %vm2185_vm2, %v2184_v1 }
 0x6c7   :  { %2071 = vmatprep.subr.bf16.mxu0 %v2186_v6 }
 0x6ca   :  { %2073 = vmatpush3.bf16.msra.mxu0 %v2324_v24 }
 0x6cb   :  { %2080 = vmatprep.subr.bf16.mxu0 %v2186_v6 }
 0x798   :  { %v785_v10 = vpop.f32.mrb[6].mxu0 }
 0x799   :  { %v786_v11 = vadd.f32 %v785_v10, %v716_v8  ;;  %v1914_v13 = vpop.f32.mrb[7].mxu0  ;;  %v2114_v8 = vpack.c.bf16 %v1361_v3, %v1360_v2  ;;  %v2116_v10 = vpack.c.bf16 %v1379_v7, %v1378_v4 }
 0x79a   :  { %v1363_v13 = vld [vmem:[%s2619_s6 + $0x38] sm:$0xff] }
 0x79b   :  { %v789_v15 = vmax.f32 %v786_v11, 0.0  ;;  %v1362_v11 = vld [vmem:[%s2619_s6 + $0x30] sm:$0xff] }
 0x79d   :  { %1924 = vmatmul.mubr.msk.f32.vlgmr.msra.gmra.mrb[10].mxu1 %vm143_vm3, %v789_v15  ;;  %v1380_v15 = vld [vmem:[%s2619_s6 + $0xc0] sm:$0xff] }
 0x79e   :  { %2076 = vmatpush3.bf16.msra.mxu1 %v2272_v5  ;;  %1945 = vmatprep.mubr.msk.f32.mxu1 %vm2185_vm2, %v2184_v1 }
 0x79f   :  { %2077 = vmatprep.subr.bf16.mxu1 %v2186_v6 }
 0x7a2   :  { %2079 = vmatpush3.bf16.msra.mxu1 %v2288_v9 }
 0x7a3   :  { %2086 = vmatprep.subr.bf16.mxu1 %v2186_v6 }
 0x870   :  { %v859_v17 = vpop.f32.mrb[10].mxu1 }
 0x871   :  { %v860_v18 = vadd.f32 %v2331_v25, %v859_v17  ;;  %v1925_v19 = vpop.f32.mrb[11].mxu1  ;;  %v1381_v17 = vld [vmem:[%s2619_s6 + $0xc8] sm:$0xff] }
 0x872   :  { %v2120_v19 = vpack.c.bf16 %v1381_v17, %v1380_v15 }
 0x873   :  { %v863_v20 = vmax.f32 %v860_v18, 0.0  ;;  %v2118_v18 = vpack.c.bf16 %v1363_v13, %v1362_v11 }
 0x875   :  { %864 = vst.msk [vmem:[#allocation2 + $0x2] sm:$0x3] %vm218_vm4, %v863_v20  ;;  %1935 = vmatmul.mubr.msk.f32.vlgmr.msra.gmra.mrb[8].mxu0 %vm143_vm3, %v863_v20  ;;  %v1364_v20 = vld [vmem:[%s2619_s6 + $0x40] sm:$0xff] }
 0x876   :  { %2082 = vmatpush3.bf16.msra.mxu0 %v2298_v12  ;;  %1956 = vmatprep.mubr.msk.f32.mxu0 %vm2185_vm2, %v2184_v1 }
 0x877   :  { %2083 = vmatprep.subr.bf16.mxu0 %v2186_v6 }
 0x87a   :  { %2085 = vmatpush3.bf16.msra.mxu0 %v2324_v24 }
 0x87b   :  { %2092 = vmatprep.subr.bf16.mxu0 %v2186_v6 }
 0x948   :  { %v938_v23 = vpop.f32.mrb[8].mxu0 }
 0x949   :  { %v939_v26 = vadd.f32 %v938_v23, %v868_v22  ;;  %v1936_v27 = vpop.f32.mrb[9].mxu0  ;;  %v1382_v22 = vld [vmem:[%s2619_s6 + $0xd0] sm:$0xff]  ;;  %v1383_v23 = vld [vmem:[%s2619_s6 + $0xd8] sm:$0xff] }
 0x94a   :  { %v2124_v27 = vpack.c.bf16 %v1383_v23, %v1382_v22 }
 0x94b   :  { %v942_v28 = vmax.f32 %v939_v26, 0.0  ;;  %v2122_v26 = vpack.c.bf16 %v1365_v21, %v1364_v20 }
 0x94d   :  { %1946 = vmatmul.mubr.msk.f32.vlgmr.msra.gmra.mrb[12].mxu1 %vm143_vm3, %v942_v28  ;;  %v1366_v28 = vld [vmem:[%s2619_s6 + $0x50] sm:$0xff] }
 0x94e   :  { %2088 = vmatpush3.bf16.msra.mxu1 %v2272_v5  ;;  %1967 = vmatprep.mubr.msk.f32.mxu1 %vm2185_vm2, %v2184_v1 }
 0x94f   :  { %2089 = vmatprep.subr.bf16.mxu1 %v2186_v6 }
 0x952   :  { %2091 = vmatpush3.bf16.msra.mxu1 %v2288_v9 }
 0x953   :  { %2098 = vmatprep.subr.bf16.mxu1 %v2186_v6 }
 0xa20   :  { %v1012_v29 = vpop.f32.mrb[12].mxu1 }
 0xa21   :  { %v1013_v30 = vadd.f32 %v2331_v25, %v1012_v29  ;;  %v1947_v31 = vpop.f32.mrb[13].mxu1  ;;  %v1367_v29 = vld [vmem:[%s2619_s6 + $0x58] sm:$0xff] }
 0xa22   :  { %v1384_v31 = vld [vmem:[%s2619_s6 + $0xe0] sm:$0xff] }
 0xa23   :  { %v1016_v32 = vmax.f32 %v1013_v30, 0.0  ;;  %v2126_v30 = vpack.c.bf16 %v1367_v29, %v1366_v28 }
 0xa25   :  { %v1024_v33 = vrot.slane %v1016_v32, %v2353_v42  ;;  %1957 = vmatmul.mubr.msk.f32.vlgmr.msra.gmra.mrb[10].mxu0 %vm143_vm3, %v1016_v32  ;;  %v1385_v32 = vld [vmem:[%s2619_s6 + $0xe8] sm:$0xff] }
 0xa26   :  { %2094 = vmatpush3.bf16.msra.mxu0 %v2298_v12  ;;  %1978 = vmatprep.mubr.msk.f32.mxu0 %vm2185_vm2, %v2184_v1  ;;  %v1031_v12 = vsub.s32 6, %v2302_v14  ;;  %v1356_v14 = vld [vmem:[%s2619_s6] sm:$0xff] }
 0xa27   :  { %1025 = vrot.lane.b32.xlu0 %v1024_v33, %s2188_s3  ;;  %2095 = vmatprep.subr.bf16.mxu0 %v2186_v6  ;;  %v2106_v57 = vpack.c.bf16 %v1357_v54, %v1356_v14  ;;  %v1368_v33 = vld [vmem:[%s2619_s6 + $0x60] sm:$0xff] }
 0xa28   :  { %v1032_v37 = vrot.slane %v2308_v16, %v1031_v12  ;;  %v1387_v12 = vld [vmem:[%s2619_s6 + $0xf8] sm:$0xff]  ;;  %v1562_v54 = vld [vmem:[%s2623_s10] sm:$0xff]  ;;  %s1668_s10 = sshll.u32 %s2191_s9, 4  ;;  %s1669_s10 = int_to_ptr.vmem [resolvable:$true] %s1668_s10 }
 0xa29   :  { %p2165_p1 = scmp.lt.s32.totalorder %s1669_s10, %s1669_s10 }
 0xa2a   :  { %2097 = vmatpush3.bf16.msra.mxu0 %v2324_v24 }
 0xa2b   :  { %708 = vrot.lane.b32.xlu0 %v707_v34, %s2190_s23  ;;  %v2128_v34 = vpack.c.bf16 %v1385_v32, %v1384_v31 }
 0xa99   :  { %v1026_v35 = vpop.permute.xlu0 %1025 }
 0xa9a   :  { %1028 = vst.msk [vmem:[#allocation2 + $0x2] sm:$0x3] %vm383_vm5, %v1026_v35  ;;  %v1369_v35 = vld [vmem:[%s2619_s6 + $0x68] sm:$0xff] }
 0xa9d   :  { %v709_v36 = vpop.permute.xlu0 %708 }
 0xa9e   :  { %712 = vst.msk [vmem:[#allocation2] sm:$0x3] %vm711_vm7, %v709_v36  ;;  %v1386_v36 = vld [vmem:[%s2619_s6 + $0xf0] sm:$0xff] }
 0xaf8   :  { %v1101_v38 = vpop.f32.mrb[10].mxu0 }
 0xaf9   :  { %v1102_v39 = vadd.f32 %v1101_v38, %v1032_v37  ;;  %v1958_v40 = vpop.f32.mrb[11].mxu0  ;;  %v2130_v37 = vpack.c.bf16 %v1369_v35, %v1368_v33  ;;  %v2132_v38 = vpack.c.bf16 %v1387_v12, %v1386_v36 }
 0xafa   :  { %v1371_v40 = vld [vmem:[%s2619_s6 + $0x78] sm:$0xff] }
 0xafb   :  { %v1105_v41 = vmax.f32 %v1102_v39, 0.0  ;;  %v1370_v39 = vld [vmem:[%s2619_s6 + $0x70] sm:$0xff] }
 0xafd   :  { %1968 = vmatmul.mubr.msk.f32.vlgmr.msra.gmra.mrb[14].mxu1 %vm143_vm3, %v1105_v41  ;;  %v2134_v41 = vpack.c.bf16 %v1371_v40, %v1370_v39 }
 0xafe   :  { %2100 = vmatpush3.bf16.msra.mxu1 %v2272_v5  ;;  %1989 = vmatprep.mubr.msk.f32.mxu1 %vm2185_vm2, %v2184_v1 }
 0xaff   :  { %2101 = vmatprep.subr.bf16.mxu1 %v2186_v6 }
 0xb02   :  { %2103 = vmatpush3.bf16.msra.mxu1 %v2288_v9  ;;  %v1195_v9 = vrot.slane %v2308_v16, %v1194_v47  ;;  %v2104_v16 = vpack.c.bf16 %v1373_v53, %v1372_v52  ;;  %v1694_v53 = vld [vmem:[%s2620_s7] ss:$0 sm:$0xff] }
 0xb03   :  { %2136 = vmatprep.subr.bf16.mxu1 %v2186_v6 }
 0xb04   :  { %2105 = vmatprep.subr.bf16.mxu0 %v2104_v16 }
 0xbd0   :  { %v1175_v24 = vpop.f32.mrb[14].mxu1 }
 0xbd1   :  { %v1176_v43 = vadd.f32 %v2331_v25, %v1175_v24  ;;  %v1969_v44 = vpop.f32.mrb[15].mxu1 }
 0xbd3   :  { %v1179_v45 = vmax.f32 %v1176_v43, 0.0 }
 0xbd5   :  { %v1187_v46 = vrot.slane %v1179_v45, %v2353_v42  ;;  %1979 = vmatmul.mubr.msk.f32.vlgmr.msra.gmra.mrb[12].mxu0 %vm143_vm3, %v1179_v45 }
 0xbd6   :  { %2107 = vmatpush3.bf16.msra.mxu0 %v2106_v57  ;;  %v2143_v57 = vpack.c.bf16 %v1563_v55, %v1562_v54 }
 0xbd7   :  { %1188 = vrot.lane.b32.xlu1 %v1187_v46, %s2189_s5  ;;  %2109 = vmatprep.subr.bf16.mxu0 %v2108_v58 }
 0xbda   :  { %2111 = vmatpush3.bf16.msra.mxu0 %v2110_v63 }
 0xbdb   :  { %2113 = vmatprep.subr.bf16.mxu0 %v2112_v0 }
 0xbde   :  { %2115 = vmatpush3.bf16.msra.mxu0 %v2114_v8 }
 0xbdf   :  { %2117 = vmatprep.subr.bf16.mxu0 %v2116_v10 }
 0xbe2   :  { %2119 = vmatpush3.bf16.msra.mxu0 %v2118_v18 }
 0xbe3   :  { %2121 = vmatprep.subr.bf16.mxu0 %v2120_v19 }
 0xbe6   :  { %2123 = vmatpush3.bf16.msra.mxu0 %v2122_v26 }
 0xbe7   :  { %2125 = vmatprep.subr.bf16.mxu0 %v2124_v27 }
 0xbea   :  { %2127 = vmatpush3.bf16.msra.mxu0 %v2126_v30 }
 0xbeb   :  { %2129 = vmatprep.subr.bf16.mxu0 %v2128_v34 }
 0xbee   :  { %2131 = vmatpush3.bf16.msra.mxu0 %v2130_v37 }
 0xbef   :  { %2133 = vmatprep.subr.bf16.mxu0 %v2132_v38 }
 0xbf2   :  { %2135 = vmatpush3.bf16.msra.mxu0 %v2134_v41 }
 0xc49   :  { %v1189_v5 = vpop.permute.xlu1 %1188 }
 0xc4a   :  { %1191 = vst.msk [vmem:[#allocation2 + $0x2] sm:$0x3] %vm547_vm6, %v1189_v5 }
 0xca8   :  { %v1264_v48 = vpop.f32.mrb[12].mxu0 }
 0xca9   :  { %v1265_v49 = vadd.f32 %v1264_v48, %v1195_v9  ;;  %v1980_v50 = vpop.f32.mrb[13].mxu0  ;;  %v1477_v48 = vld [vmem:[%s2621_s8] sm:$0xff] }
 0xcaa   :  { %v1480_v50 = vld [vmem:[%s2621_s8 + $0x18] sm:$0xff] }
 0xcab   :  { %v1268_v51 = vmax.f32 %v1265_v49, 0.0 }
 0xcad   :  { %1990 = vmatmul.mubr.msk.f32.vlgmr.msra.gmra.mrb[16].mxu1 %vm143_vm3, %v1268_v51 }
 0xcae   :  { %2000 = vmatprep.mubr.msk.f32.mxu1 %vm2185_vm2, %v2184_v1 }
 0xd80   :  { %v1338_v24 = vpop.f32.mrb[16].mxu1 }
 0xd81   :  { %v1339_v43 = vadd.f32 %v2331_v25, %v1338_v24  ;;  %v1991_v44 = vpop.f32.mrb[17].mxu1  ;;  %v1478_v25 = vld [vmem:[%s2621_s8 + $0x8] sm:$0xff] }
 0xd82   :  { %v2137_v49 = vpack.c.bf16 %v1478_v25, %v1477_v48 }
 0xd83   :  { %v1342_v45 = vmax.f32 %v1339_v43, 0.0 }
 0xd84   :  { %2138 = vmatpush3.bf16.msra.mxu1 %v2137_v49 }
 0xd85   :  { %v1350_v46 = vrot.slane %v1342_v45, %v2353_v42  ;;  %2139 = vmatprep.subr.bf16.mxu1 %v2186_v6  ;;  %v1479_v42 = vld [vmem:[%s2621_s8 + $0x10] sm:$0xff] }
 0xd86   :  { %v2140_v51 = vpack.c.bf16 %v1480_v50, %v1479_v42 }
 0xd87   :  { %1351 = vrot.lane.b32.xlu1 %v1350_v46, %s2190_s23 }
 0xd88   :  { %2141 = vmatpush3.bf16.msra.mxu1 %v2140_v51 }
 0xd89   :  { %2142 = vmatprep.subr.bf16.mxu1 %v2186_v6 }
 0xdf9   :  { %v1352_v5 = vpop.permute.xlu1 %1351 }
 0xdfa   :  { %1354 = vst.msk [vmem:[#allocation2 + $0x2] sm:$0x3] %vm711_vm7, %v1352_v5 }
 0xe01   :  { %v1695_v47 = vld.sshfl [vmem:[#allocation2] sm:$0x33 pattern:$0x76325410] }
 0xe02   :  { %v1403_v9 = vcombine.high %v1695_v47, %v1695_v47 }
 0xe04   :  { %1470 = vmatprep.mubr.f32.mxu0 %v1403_v9 }
 0xe05   :  { %1471 = vmatmul.mubr.f32.vlgmr.msra.gmra.mrb[14].mxu0 %v1695_v47 }
 0xed8   :  { %v1809_v52 = vpop.f32.mrb[14].mxu0 }
 0xed9   :  { %v1810_v14 = vpop.f32.mrb[15].mxu0 }
 0xeda   :  { %v1811_v16 = vadd.f32 %v1810_v14, %v1809_v52 }
 0xedc   :  { %v1473_v56 = vadd.f32 %v1811_v16, %v1694_v53 }
 0xede   :  { %v1476_v58 = vmax.f32 %v1473_v56, 0.0 }
 0xee0   :  { %2001 = vmatmul.mubr.msk.f32.vlgmr.msra.gmra.mrb[18].mxu1 %vm143_vm3, %v1476_v58 }
 0xee1   :  { %2144 = vmatpush3.bf16.msra.mxu1 %v2143_v57  ;;  %2011 = vmatprep.mubr.msk.f32.mxu1 %vm2185_vm2, %v2184_v1 }
 0xee2   :  { %2145 = vmatprep.subr.bf16.mxu1 %v2186_v6  ;;  %v1698_v6 = vld [vmem:[%s2624_s11] ss:$0 sm:$0xff]  ;;  %s2160_s11 = scalar_lea.vmem %s1669_s10, 32 }
 0xee3   :  { %p2161_p0 = scmp.ne.s32.totalorder %s1669_s10, %s2160_s11  ;;  %p2166_p2 = scmp.lt.s32.totalorder %s2160_s11, %s2160_s11 }
 0xee5   :  { %2147 = vmatpush3.bf16.msra.mxu1 %v2146_v61  ;;  %p2167_p3 = por %p2166_p2, %p2165_p1 }
 0xee7   :  { %p2168_p4 = pnand %p2167_p3, %p2161_p0 }
 0xfb3   :  { %v1557_v63 = vpop.f32.mrb[18].mxu1 }
 0xfb4   :  { %v1558_v0 = vadd.f32 %v1696_v62, %v1557_v63  ;;  %v2002_v2 = vpop.f32.mrb[19].mxu1 }
 0xfb6   :  { %v1561_v1 = vmax.f32 %v1558_v0, 0.0 }
 0xfb8   :  { %2012 = vmatmul.mubr.msk.f32.vlgmr.msra.gmra.mrb[20].mxu1 %vm143_vm3, %v1561_v1 }
0x108b   :  { %v1642_v3 = vpop.f32.mrb[20].mxu1 }
0x108c   :  { %v1643_v4 = vadd.f32 %v1698_v6, %v1642_v3  ;;  %v2013_v7 = vpop.f32.mrb[21].mxu1 }
0x108e   :  { %v1647_v8 = vsel %vm1646_vm8, %v1643_v4, -inf }
0x108f   :  { %1648 = vmax.xlane.f32.xlu0 %v1647_v8 }
0x111c   :  { %v1649_v10 = vpop.xlane.xlu0 %1648 }
0x111d   :  { %v1650_v11 = vsub.f32 %v1643_v4, %v1649_v10 }
0x111f   :  { %v1651_v13 = vmul.f32 1.442695, %v1650_v11 }
0x1121   :  { %2156 = vpow2.f32 %v1651_v13 }
0x112b   :  { %v2157_v15 = vpop.eup %2156 }
0x112c   :  { %v1653_v17 = vsel %vm1646_vm8, %v2157_v15, 0.0 }
0x112d   :  { %1654 = vadd.xlane.f32.xlu1 %v1653_v17 }
0x11ba   :  { %v1655_v18 = vpop.xlane.xlu1 %1654 }
0x11bb   :  { %2158 = vrcp.f32 %v1655_v18 }
0x11c5   :  { %v2159_v19 = vpop.eup %2158 }
0x11c6   :  { %v1657_v20 = vmul.f32 %v2159_v19, %v2157_v15 }
0x11c8   :  { %v1659_v21 = vsel %vm1658_vm9, %v1657_v20, %v1643_v4 }
0x11c9   :  { %1661 = vst.msk [vmem:[#allocation3] sm:$0x3] %vm1660_vm10, %v1659_v21 }
0x11ca   :  { %2171 = shalt.err (!%p2168_p4)
}
0x11cb   :  { %s2172_s2 = scalar_lea.hbm %s2625_s12, 32 }
0x11cc   :  { %p2173_p5 = scmp.ne.s32.totalorder %s2625_s12, %s2172_s2  ;;  %p2176_p6 = scmp.lt.u32.totalorder %s2172_s2, %s2625_s12 }
0x11ce   :  { %p2178_p7 = pnand %p2176_p6, %p2173_p5 }
0x11d0   :  { %2181 = shalt.err (!%p2178_p7)
}
0x11d1   :  { %1671 = dma.vmem_to_hbm [thread:$0]  %s1669_s10, 32, %s2625_s12, [#allocation4]  }
0x11d2   :  { %2182 = dma.done.wait [#allocation4], 32  }
0x11d3   :  { %2183 = vsyncadd [#allocation4], 4294967264 }
0x11d4   :  { %1675 = vsyncpa [#allocation4], 1 }

</bundles_post_ra>
